<compile_context>
chip_gen: v5e
topology: v5e:2x2
jax: 0.10.0
libtpu: 0.0.40
codegen_flags: <defaults>
</compile_context>

<pallas_src>
import functools

import jax
import jax.numpy as jnp
import numpy as np
from jax.experimental import pallas as pl
from jax.experimental.pallas import tpu as pltpu

PATCH = 16            # Conv2d kernel_size == stride == 16
NP_TILE_MAX = 1024    # patch rows per pipelined tile (multiple of 128)
T_TILE_MAX = 256      # token rows per output tile (multiple of 128)


def _round_up(x: int, m: int) -> int:
    return ((x + m - 1) // m) * m


# ----------------------------------------------------------------------------
# Pallas kernel
# ----------------------------------------------------------------------------
def _vision_encoder_kernel(patches_ref, pm_ref, wct_ref, bc_ref, wlt_ref,
                           bl_ref, o_ref, acc_ref):
    k = pl.program_id(2)

    @pl.when(k == 0)
    def _init():
        acc_ref[...] = jnp.zeros_like(acc_ref)

    # pooled += pool_mat_tile @ patches_tile   (bf16 MXU, f32 accumulate)
    acc_ref[...] += jnp.dot(pm_ref[...], patches_ref[0],
                            preferred_element_type=jnp.float32)

    @pl.when(k == pl.num_programs(2) - 1)
    def _finalize():
        pooled = acc_ref[...].astype(wct_ref.dtype)                  # [t, 768]
        # conv-as-matmul applied to the pooled patches (bias commutes exactly)
        feat = jnp.dot(pooled, wct_ref[...],
                       preferred_element_type=jnp.float32) + bc_ref[...]
        out = jnp.dot(feat.astype(wlt_ref.dtype), wlt_ref[...],
                      preferred_element_type=jnp.float32) + bl_ref[...]
        o_ref[0] = out.astype(o_ref.dtype)


# ----------------------------------------------------------------------------
# Host-side helpers
# ----------------------------------------------------------------------------
def _adaptive_pool_matrix(hp: int, wp: int, num_tokens: int) -> np.ndarray:
    """M [T, hp*wp] s.t. M @ feat_flat == AdaptiveAvgPool2d((1, T))."""
    M = np.zeros((num_tokens, hp * wp), dtype=np.float32)
    for t in range(num_tokens):
        ws = (t * wp) // num_tokens                 # floor
        we = -((-(t + 1) * wp) // num_tokens)       # ceil
        weight = 1.0 / (hp * (we - ws))
        for h in range(hp):
            for w in range(ws, we):
                M[t, h * wp + w] = weight
    return M


def _extract_patches(pixel_values: jnp.ndarray, dtype=None) -> jnp.ndarray:
    """NCHW [B,3,H,W] -> [B, (H//16)*(W//16), 3*16*16], (C,kh,kw) flattening."""
    B, C, H, W = pixel_values.shape
    hp, wp = H // PATCH, W // PATCH
    x = pixel_values[:, :, :hp * PATCH, :wp * PATCH]
    if dtype is not None:
        x = x.astype(dtype)
    x = x.reshape(B, C, hp, PATCH, wp, PATCH)
    x = jnp.transpose(x, (0, 2, 4, 1, 3, 5))        # [B, hp, wp, C, 16, 16]
    return x.reshape(B, hp * wp, C * PATCH * PATCH)


@functools.partial(jax.jit,
                   static_argnames=("output_dim", "num_image_tokens",
                                    "compute_dtype"))
def vision_encoder_forward(pixel_values, conv_w, conv_b, lin_w, lin_b, *,
                           output_dim: int, num_image_tokens: int,
                           compute_dtype=jnp.bfloat16):
    B, C, H, W = pixel_values.shape
    hp, wp = H // PATCH, W // PATCH
    n_patches = hp * wp
    c_mid = output_dim // 4
    p_dim = C * PATCH * PATCH                       # 768, multiple of 128
    T = num_image_tokens

    # ---- lane-dense padded feature dims ------------------------------------
    c_mid_p = _round_up(c_mid, 128)
    d_p = _round_up(output_dim, 128)

    # ---- Np (reduction) tiling ---------------------------------------------
    if n_patches > NP_TILE_MAX:
        np_tile = NP_TILE_MAX
        np_pad = _round_up(n_patches, np_tile)
    else:                                           # single full-extent block
        np_tile = n_patches
        np_pad = n_patches
    n_k = np_pad // np_tile

    # ---- T (token) tiling ---------------------------------------------------
    if T > T_TILE_MAX:
        t_tile = T_TILE_MAX
        t_pad = _round_up(T, t_tile)
    else:
        t_tile = T
        t_pad = T
    n_t = t_pad // t_tile

    # ---- operand preparation (bf16 compute operands, f32 biases) -----------
    patches = _extract_patches(pixel_values, dtype=compute_dtype)
    if np_pad != n_patches:
        patches = jnp.pad(patches, ((0, 0), (0, np_pad - n_patches), (0, 0)))

    pm_np = np.zeros((t_pad, np_pad), dtype=np.float32)
    pm_np[:T, :n_patches] = _adaptive_pool_matrix(hp, wp, T)
    pm = jnp.asarray(pm_np, dtype=compute_dtype)

    wct = conv_w.reshape(c_mid, p_dim).T.astype(compute_dtype)       # [768, Cmid]
    wct = jnp.pad(wct, ((0, 0), (0, c_mid_p - c_mid)))
    bc = jnp.pad(conv_b.reshape(1, c_mid).astype(jnp.float32),
                 ((0, 0), (0, c_mid_p - c_mid)))
    wlt = lin_w.T.astype(compute_dtype)                              # [Cmid, D]
    wlt = jnp.pad(wlt, ((0, c_mid_p - c_mid), (0, d_p - output_dim)))
    bl = jnp.pad(lin_b.reshape(1, output_dim).astype(jnp.float32),
                 ((0, 0), (0, d_p - output_dim)))

    # ---- cost hint for XLA scheduling ---------------------------------------
    cd_size = jnp.dtype(compute_dtype).itemsize
    flops = (2 * B * n_t * t_tile * np_pad * p_dim
             + 2 * B * t_pad * (p_dim * c_mid_p + c_mid_p * d_p))
    bytes_accessed = (B * n_t * np_pad * p_dim * cd_size
                      + t_pad * np_pad * cd_size
                      + (p_dim * c_mid_p + c_mid_p * d_p) * cd_size
                      + (c_mid_p + d_p) * 4
                      + B * t_pad * d_p * pixel_values.dtype.itemsize)

    out = pl.pallas_call(
        _vision_encoder_kernel,
        out_shape=jax.ShapeDtypeStruct((B, t_pad, d_p), pixel_values.dtype),
        grid_spec=pltpu.PrefetchScalarGridSpec(
            num_scalar_prefetch=0,
            grid=(B, n_t, n_k),
            in_specs=[
                pl.BlockSpec((1, np_tile, p_dim), lambda b, t, k: (b, k, 0)),
                pl.BlockSpec((t_tile, np_tile), lambda b, t, k: (t, k)),
                pl.BlockSpec((p_dim, c_mid_p), lambda b, t, k: (0, 0)),
                pl.BlockSpec((1, c_mid_p), lambda b, t, k: (0, 0)),
                pl.BlockSpec((c_mid_p, d_p), lambda b, t, k: (0, 0)),
                pl.BlockSpec((1, d_p), lambda b, t, k: (0, 0)),
            ],
            out_specs=pl.BlockSpec((1, t_tile, d_p), lambda b, t, k: (b, t, 0)),
            scratch_shapes=[pltpu.VMEM((t_tile, p_dim), jnp.float32)],
        ),
        compiler_params=pltpu.CompilerParams(
            dimension_semantics=("parallel", "parallel", "arbitrary"),
            vmem_limit_bytes=32 * 1024 * 1024),
        cost_estimate=pl.CostEstimate(flops=flops, transcendentals=0,
                                      bytes_accessed=bytes_accessed),
    )(patches, pm, wct, bc, wlt, bl)

    # slice off the T / D lane padding
    return out[:, :T, :output_dim]


def vision_encoder_dummy(pixel_values, params, *, output_dim, num_image_tokens):
    """Full module forward, including the degenerate-input branch (host glue)."""
    # TODO(synk): the degenerate-input early return is a Python-level shape
    # check (as in the PyTorch module); it is host glue, not jit-traceable.
    if pixel_values.ndim != 4 or pixel_values.shape[1] != 3:
        batch = pixel_values.shape[0] if pixel_values.ndim >= 1 else 1
        return jnp.zeros((batch, num_image_tokens, output_dim),
                         dtype=pixel_values.dtype)
    return vision_encoder_forward(
        pixel_values, params["conv_w"], params["conv_b"],
        params["lin_w"], params["lin_b"],
        output_dim=output_dim, num_image_tokens=num_image_tokens)


# ----------------------------------------------------------------------------
# Pure-JAX f32 reference (PyTorch op order) for a silent correctness check
# ----------------------------------------------------------------------------
def _reference(pixel_values, params, *, output_dim, num_image_tokens):
    B, C, H, W = pixel_values.shape
    hp, wp = H // PATCH, W // PATCH
    c_mid = output_dim // 4
    patches = _extract_patches(pixel_values, dtype=jnp.float32)
    feat = patches @ params["conv_w"].reshape(c_mid, -1).T + params["conv_b"]
    feat = feat.reshape(B, hp * wp, c_mid)
    pm = jnp.asarray(_adaptive_pool_matrix(hp, wp, num_image_tokens))
    pooled = jnp.einsum("tp,bpc->btc", pm, feat)
    return pooled @ params["lin_w"].T + params["lin_b"]


if __name__ == "__main__":
    # Small but consistent shapes: output_dim=32 (c_mid=8), 8 image tokens,
    # input 2 x 3 x 32 x 64 -> conv output spatial 2 x 4 -> 8 patches.
    OUTPUT_DIM = 32
    NUM_TOKENS = 8
    B, C, H, W = 2, 3, 32, 64
    C_MID = OUTPUT_DIM // 4

    key = jax.random.PRNGKey(0)
    k_x, k_cw, k_cb, k_lw, k_lb = jax.random.split(key, 5)

    pixel_values = jax.random.normal(k_x, (B, C, H, W), dtype=jnp.float32)
    params = {
        "conv_w": jax.random.normal(k_cw, (C_MID, C, PATCH, PATCH),
                                    dtype=jnp.float32) * 0.02,
        "conv_b": jax.random.normal(k_cb, (C_MID,), dtype=jnp.float32) * 0.02,
        "lin_w": jax.random.normal(k_lw, (OUTPUT_DIM, C_MID),
                                   dtype=jnp.float32) * 0.02,
        "lin_b": jax.random.normal(k_lb, (OUTPUT_DIM,), dtype=jnp.float32) * 0.02,
    }

    out = vision_encoder_dummy(pixel_values, params,
                               output_dim=OUTPUT_DIM,
                               num_image_tokens=NUM_TOKENS)
    out = jax.block_until_ready(out)
    assert out.shape == (B, NUM_TOKENS, OUTPUT_DIM)
    assert out.dtype == pixel_values.dtype

    ref = _reference(pixel_values, params,
                     output_dim=OUTPUT_DIM, num_image_tokens=NUM_TOKENS)
    # bf16 operands + f32 accumulation vs full-f32 reference -> loosened tol.
    np.testing.assert_allclose(np.asarray(out), np.asarray(ref),
                               rtol=2e-2, atol=2e-3)

    # degenerate-input branch (non-3-channel input -> zeros), pure glue
    bad = jnp.ones((B, 5, H, W), dtype=jnp.float32)
    zeros = vision_encoder_dummy(bad, params, output_dim=OUTPUT_DIM,
                                 num_image_tokens=NUM_TOKENS)
    assert zeros.shape == (B, NUM_TOKENS, OUTPUT_DIM) and float(zeros.sum()) == 0.0

    print("KERNEL_OK")
</pallas_src>

<mosaic_0001>
module attributes {stable_mosaic.version = 11 : i64} {
  func.func @_vision_encoder_kernel(%arg0: i32, %arg1: i32, %arg2: i32, %arg3: memref<1x8x768xbf16, #tpu.memory_space<vmem>>, %arg4: memref<8x8xbf16, #tpu.memory_space<vmem>>, %arg5: memref<768x128xbf16, #tpu.memory_space<vmem>>, %arg6: memref<1x128xf32, #tpu.memory_space<vmem>>, %arg7: memref<128x128xbf16, #tpu.memory_space<vmem>>, %arg8: memref<1x128xf32, #tpu.memory_space<vmem>>, %arg9: memref<1x8x128xf32, #tpu.memory_space<vmem>>, %arg10: memref<8x768xf32, #tpu.memory_space<vmem>>) attributes {dimension_semantics = [#tpu.dimension_semantics<parallel>, #tpu.dimension_semantics<parallel>, #tpu.dimension_semantics<arbitrary>], iteration_bounds = array<i64: 2, 1, 1>, scalar_prefetch = 0 : i64, scratch_operands = 1 : i64, tpu.core_type = #tpu.core_type<tc>, window_params = [{transform_indices = @transform_0, window_bounds = array<i64: 1, 8, 768>}, {transform_indices = @transform_1, window_bounds = array<i64: 8, 8>}, {pipeline_mode = #tpu.pipeline_mode<synchronous>, transform_indices = @transform_2, window_bounds = array<i64: 768, 128>}, {pipeline_mode = #tpu.pipeline_mode<synchronous>, transform_indices = @transform_3, window_bounds = array<i64: 1, 128>}, {pipeline_mode = #tpu.pipeline_mode<synchronous>, transform_indices = @transform_4, window_bounds = array<i64: 128, 128>}, {pipeline_mode = #tpu.pipeline_mode<synchronous>, transform_indices = @transform_5, window_bounds = array<i64: 1, 128>}, {transform_indices = @transform_6, window_bounds = array<i64: 1, 8, 128>}]} {
    %c0_i32 = arith.constant 0 : i32
    %0 = arith.cmpi eq, %arg2, %c0_i32 : i32
    %1 = arith.extui %0 : i1 to i32
    %c0_i32_0 = arith.constant 0 : i32
    %2 = arith.cmpi ne, %1, %c0_i32_0 : i32
    scf.if %2 {
      %cst_11 = arith.constant 0.000000e+00 : f32
      %13 = vector.broadcast %cst_11 : f32 to vector<8x768xf32>
      %c0_12 = arith.constant 0 : index
      %c0_13 = arith.constant 0 : index
      %14 = vector.load %arg10[%c0_12, %c0_13] : memref<8x768xf32, #tpu.memory_space<vmem>>, vector<8x768xf32>
      tpu.vector_store %arg10[%c0_12, %c0_13], %13 {strides = array<i32>} : memref<8x768xf32, #tpu.memory_space<vmem>>, vector<8x768xf32>,
    } else {
    }
    %c0 = arith.constant 0 : index
    %c0_1 = arith.constant 0 : index
    %3 = vector.load %arg10[%c0, %c0_1] : memref<8x768xf32, #tpu.memory_space<vmem>>, vector<8x768xf32>
    %c0_2 = arith.constant 0 : index
    %c0_3 = arith.constant 0 : index
    %4 = vector.load %arg4[%c0_2, %c0_3] : memref<8x8xbf16, #tpu.memory_space<vmem>>, vector<8x8xbf16>
    %c0_4 = arith.constant 0 : index
    %c0_5 = arith.constant 0 : index
    %c0_6 = arith.constant 0 : index
    %5 = vector.load %arg3[%c0_4, %c0_5, %c0_6] : memref<1x8x768xbf16, #tpu.memory_space<vmem>>, vector<1x8x768xbf16>
    %6 = vector.shape_cast %5 : vector<1x8x768xbf16> to vector<8x768xbf16>
    %cst = arith.constant dense<0.000000e+00> : vector<8x768xf32>
    %7 = tpu.matmul %4, %6, %cst {dimension_numbers = #tpu.dot_dimension_numbers<[1], [0], [0], [1], [0, 0, 1, 1], [], []>} : vector<8x8xbf16>, vector<8x768xbf16>, vector<8x768xf32> -> vector<8x768xf32>
    %8 = arith.addf %3, %7 : vector<8x768xf32>
    %c0_7 = arith.constant 0 : index
    %c0_8 = arith.constant 0 : index
    %9 = vector.load %arg10[%c0_7, %c0_8] : memref<8x768xf32, #tpu.memory_space<vmem>>, vector<8x768xf32>
    tpu.vector_store %arg10[%c0_7, %c0_8], %8 {strides = array<i32>} : memref<8x768xf32, #tpu.memory_space<vmem>>, vector<8x768xf32>,
    %c0_i32_9 = arith.constant 0 : i32
    %10 = arith.cmpi eq, %arg2, %c0_i32_9 : i32
    %11 = arith.extui %10 : i1 to i32
    %c0_i32_10 = arith.constant 0 : i32
    %12 = arith.cmpi ne, %11, %c0_i32_10 : i32
    scf.if %12 {
      %c0_11 = arith.constant 0 : index
      %c0_12 = arith.constant 0 : index
      %13 = vector.load %arg10[%c0_11, %c0_12] : memref<8x768xf32, #tpu.memory_space<vmem>>, vector<8x768xf32>
      %14 = arith.truncf %13 : vector<8x768xf32> to vector<8x768xbf16>
      %c0_13 = arith.constant 0 : index
      %c0_14 = arith.constant 0 : index
      %15 = vector.load %arg5[%c0_13, %c0_14] : memref<768x128xbf16, #tpu.memory_space<vmem>>, vector<768x128xbf16>
      %cst_15 = arith.constant dense<0.000000e+00> : vector<8x128xf32>
      %16 = tpu.matmul %14, %15, %cst_15 {dimension_numbers = #tpu.dot_dimension_numbers<[1], [0], [0], [1], [0, 0, 1, 1], [], []>} : vector<8x768xbf16>, vector<768x128xbf16>, vector<8x128xf32> -> vector<8x128xf32>
      %c0_16 = arith.constant 0 : index
      %c0_17 = arith.constant 0 : index
      %17 = vector.load %arg6[%c0_16, %c0_17] : memref<1x128xf32, #tpu.memory_space<vmem>>, vector<1x128xf32>
      %18 = vector.broadcast %17 : vector<1x128xf32> to vector<8x128xf32>
      %19 = arith.addf %16, %18 : vector<8x128xf32>
      %20 = arith.truncf %19 : vector<8x128xf32> to vector<8x128xbf16>
      %c0_18 = arith.constant 0 : index
      %c0_19 = arith.constant 0 : index
      %21 = vector.load %arg7[%c0_18, %c0_19] : memref<128x128xbf16, #tpu.memory_space<vmem>>, vector<128x128xbf16>
      %cst_20 = arith.constant dense<0.000000e+00> : vector<8x128xf32>
      %22 = tpu.matmul %20, %21, %cst_20 {dimension_numbers = #tpu.dot_dimension_numbers<[1], [0], [0], [1], [0, 0, 1, 1], [], []>} : vector<8x128xbf16>, vector<128x128xbf16>, vector<8x128xf32> -> vector<8x128xf32>
      %c0_21 = arith.constant 0 : index
      %c0_22 = arith.constant 0 : index
      %23 = vector.load %arg8[%c0_21, %c0_22] : memref<1x128xf32, #tpu.memory_space<vmem>>, vector<1x128xf32>
      %24 = vector.broadcast %23 : vector<1x128xf32> to vector<8x128xf32>
      %25 = arith.addf %22, %24 : vector<8x128xf32>
      %c0_23 = arith.constant 0 : index
      %c0_24 = arith.constant 0 : index
      %c0_25 = arith.constant 0 : index
      %26 = vector.load %arg9[%c0_23, %c0_24, %c0_25] : memref<1x8x128xf32, #tpu.memory_space<vmem>>, vector<1x8x128xf32>
      %27 = vector.shape_cast %26 : vector<1x8x128xf32> to vector<8x128xf32>
      %28 = vector.shape_cast %25 : vector<8x128xf32> to vector<1x8x128xf32>
      tpu.vector_store %arg9[%c0_23, %c0_24, %c0_25], %28 {strides = array<i32>} : memref<1x8x128xf32, #tpu.memory_space<vmem>>, vector<1x8x128xf32>,
    } else {
    }
    return
  }
  func.func @transform_0(%arg0: i32, %arg1: i32, %arg2: i32) -> (i32, i32, i32) {
    %c0_i32 = arith.constant 0 : i32
    %c0_i32_0 = arith.constant 0 : i32
    return %arg0, %arg2, %c0_i32 : i32, i32, i32
  }
  func.func @transform_1(%arg0: i32, %arg1: i32, %arg2: i32) -> (i32, i32) {
    %c0_i32 = arith.constant 0 : i32
    return %arg1, %arg2 : i32, i32
  }
  func.func @transform_2(%arg0: i32, %arg1: i32, %arg2: i32) -> (i32, i32) {
    %c0_i32 = arith.constant 0 : i32
    %c0_i32_0 = arith.constant 0 : i32
    %c0_i32_1 = arith.constant 0 : i32
    return %c0_i32, %c0_i32_0 : i32, i32
  }
  func.func @transform_3(%arg0: i32, %arg1: i32, %arg2: i32) -> (i32, i32) {
    %c0_i32 = arith.constant 0 : i32
    %c0_i32_0 = arith.constant 0 : i32
    %c0_i32_1 = arith.constant 0 : i32
    return %c0_i32, %c0_i32_0 : i32, i32
  }
  func.func @transform_4(%arg0: i32, %arg1: i32, %arg2: i32) -> (i32, i32) {
    %c0_i32 = arith.constant 0 : i32
    %c0_i32_0 = arith.constant 0 : i32
    %c0_i32_1 = arith.constant 0 : i32
    return %c0_i32, %c0_i32_0 : i32, i32
  }
  func.func @transform_5(%arg0: i32, %arg1: i32, %arg2: i32) -> (i32, i32) {
    %c0_i32 = arith.constant 0 : i32
    %c0_i32_0 = arith.constant 0 : i32
    %c0_i32_1 = arith.constant 0 : i32
    return %c0_i32, %c0_i32_0 : i32, i32
  }
  func.func @transform_6(%arg0: i32, %arg1: i32, %arg2: i32) -> (i32, i32, i32) {
    %c0_i32 = arith.constant 0 : i32
    %c0_i32_0 = arith.constant 0 : i32
    return %arg0, %arg1, %c0_i32 : i32, i32, i32
  }
}

</mosaic_0001>

<bundles_post_ra>
// kernel: vision_encoder_forward.1
= control target key start
LH: loop header
LB: loop body
LE: loop exit
PB: predicated region body
PF: predicated region fallthrough
CT: control target
= control target key end

     0   :  { %11 = vsyncpa [#allocation4], 0  ;;  %s1898_s0 = inlined_call_operand.vmem [shape: bf16[2,8,768], index: 0, kind: input, shape index: {}]   ;;  %s1899_s1 = inlined_call_operand.vmem [shape: bf16[8,8], index: 1, kind: input, shape index: {}]   ;;  %s1900_s2 = inlined_call_operand.vmem [shape: bf16[768,128], index: 2, kind: input, shape index: {}]   ;;  %s1901_s3 = inlined_call_operand.vmem [shape: f32[1,128], index: 3, kind: input, shape index: {}]   ;;  %s1902_s4 = inlined_call_operand.vmem [shape: bf16[128,128], index: 4, kind: input, shape index: {}]   ;;  %s1903_s5 = inlined_call_operand.vmem [shape: f32[1,128], index: 5, kind: input, shape index: {}]   ;;  %s1904_s6 = inlined_call_operand.hbm [shape: f32[2,8,128], index: 6, kind: output, shape index: {}]  }
   0x1   :  { %13 = vsyncpa [#allocation4 + $0x1], 0  ;;  %s1612_s21 = smov 0   ;;  %s1614_s22 = smov 0  }
   0x2   :  { %s1616_s23 = smov 0   ;;  %s1618_s24 = smov 0  }
   0x3   :  { %s1620_s25 = smov 0   ;;  %s1622_s26 = smov 0  }
   0x4 LB: > { %s1141_s27 = sadd.s32 4294967295, %s1575_s26   ;;  %s1142_s28 = sadd.s32 4294967294, %s1575_s26   ;;  %s1575_s26 = sphi %s1622_s26, %s19_s26   ;;  %s1571_s25 = sphi %s1620_s25, %s1911_s25   ;;  %s1567_s24 = sphi %s1618_s24, %s1910_s24   ;;  %s1563_s23 = sphi %s1616_s23, %s1909_s23   ;;  %s1559_s22 = sphi %s1614_s22, %s1908_s22   ;;  %s1555_s21 = sphi %s1612_s21, %s1907_s21  }
   0x5   : > { %s38_s29 = sadd.s32 1, %s1571_s25  ;;  %s187_s30 = sadd.s32 1, %s1563_s23 }
   0x6   : > { %p40_p0 = scmp.ge.s32.totalorder %s38_s29, 2  ;;  %p197_p1 = scmp.ne.s32.totalorder %s1563_s23, %s1559_s22 }
   0x7   : > { %p198_p2 = scmp.eq.s32.totalorder %s1141_s27, 1  ;;  %p203_p3 = scmp.ne.s32.totalorder %s1559_s22, %s1555_s21 }
   0x8   : > { %s1913_s29 = smov (%p40_p0, %s38_s29), 0  ;;  %p204_p5 = scmp.eq.s32.totalorder %s1142_s28, 1 }
   0x9   : > { %p1652_p4 = por %p198_p2, %p197_p1  ;;  %s182_s8 = ssub.s32 %s1571_s25, %s1913_s29 }
   0xa   : > { %p1146_p6 = scmp.ge.s32.totalorder %s1575_s26, 1  ;;  %p185_p7 = scmp.eq.s32.totalorder %s182_s8, 0 }
   0xb   : > { %p1659_p8 = por %p204_p5, %p203_p3  ;;  %p256_p9 = scmp.lt.s32.totalorder %s1575_s26, 3 }
   0xc   : > { %s1665_s10 = scalar_select %p185_p7, %s1563_s23, %s187_s30  }
   0xd   : > { %p257_p10 = pnand %p1146_p6, %p256_p9 }
   0xe   : > { %p297_p11 = scmp.lt.s32.totalorder (!%p257_p10), %s1567_s24, 1  ;;  %s294_s20 = sand.u32 (!%p257_p10), 1, %s1559_s22  }
   0xf   : > { %260 = sbr.rel (%p257_p10) target bundleno = 464 (0x1d0), region = 44  ;;  %s1380_s27 = sshll.u32 (!%p257_p10), %s1567_s24, 3 }
  0x10   : > { %s1147_s28 = sshll.u32 (!%p257_p10), %s294_s20, 3  ;;  %s1027_s17 = scalar_lea.sflag (!%p257_p10), [#allocation4], %s294_s20 }
  0x11   : > { %s296_s14 = scalar_lea.vmem (!%p257_p10), [#allocation3], %s1147_s28  ;;  %s1517_s30 = scalar_lea.hbm (!%p257_p10), %s1904_s6, 16 }
  0x14   : > { %s298_s11 = scalar_select %p297_p11, %s1567_s24, 1  ;;  %vm353_vm0 = vcmask 1043456   ;;  %v330_v18 = vld [vmem:[%s1899_s1] sm:$0xf]  ;;  %vm349_vm1 = vcmask 64512   ;;  %v1390_v22 = vld [vmem:[%s1900_s2 + $0x38] sm:$0xff] }
  0x15   : > { %v1398_v23 = vld [vmem:[%s1900_s2 + $0x78] sm:$0xff]  ;;  %v1389_v24 = vld [vmem:[%s1900_s2 + $0x30] sm:$0xff]  ;;  %v1388_v27 = vld [vmem:[%s1900_s2 + $0x28] sm:$0xff] }
  0x16   : > { %s1439_s12 = smul.u32 24, %s298_s11  ;;  %v1397_v25 = vld [vmem:[%s1900_s2 + $0x70] sm:$0xff]  ;;  %v1406_v26 = vld [vmem:[%s1900_s2 + $0xb8] sm:$0xff]  ;;  %v1396_v28 = vld [vmem:[%s1900_s2 + $0x68] sm:$0xff]  ;;  %s1038_s11 = scalar_lea.hbm %s1904_s6, %s1380_s27 }
  0x17   : > { %v1387_v29 = vld [vmem:[%s1900_s2 + $0x20] sm:$0xff]  ;;  %v1414_v31 = vld [vmem:[%s1900_s2 + $0xf8] sm:$0xff]  ;;  %v1385_v34 = vld [vmem:[%s1900_s2 + $0x10] sm:$0xff]  ;;  %s1042_s16 = sshll.u32 %s1038_s11, 4  ;;  %s1043_s16 = int_to_ptr.hbm [resolvable:$true] %s1042_s16 }
  0x18   : > { %s305_s15 = scalar_lea.vmem %s1898_s0, %s1439_s12  ;;  %v1395_v30 = vld [vmem:[%s1900_s2 + $0x60] sm:$0xff]  ;;  %v1386_v32 = vld [vmem:[%s1900_s2 + $0x18] sm:$0xff]  ;;  %v1393_v35 = vld [vmem:[%s1900_s2 + $0x50] sm:$0xff]  ;;  %s1511_s24 = sshra.s32 %s1043_s16, 4  ;;  %s1512_s24 = int_to_ptr.hbm [resolvable:$true] %s1511_s24 }
  0x19   : > { %v331_v0 = vld [vmem:[%s305_s15] sm:$0xff]  ;;  %v332_v1 = vld [vmem:[%s305_s15 + $0x8] sm:$0xff]  ;;  %v333_v2 = vld [vmem:[%s305_s15 + $0x10] sm:$0xff]  ;;  %s1040_s15 = sshll.u32 %s296_s14, 4  ;;  %s1513_s18 = scalar_lea.hbm %s1512_s24, 8  ;;  %s1041_s15 = int_to_ptr.vmem [resolvable:$true] %s1040_s15 }
  0x1a   : > { %v337_v3 = vunpack.c.l.b16 %v331_v0  ;;  %v338_v4 = vunpack.c.h.b16 %v331_v0  ;;  %v339_v5 = vunpack.c.l.b16 %v332_v1  ;;  %v342_v6 = vunpack.c.h.b16 %v333_v2  ;;  %v1394_v33 = vld [vmem:[%s1900_s2 + $0x58] sm:$0xff]  ;;  %v1384_v36 = vld [vmem:[%s1900_s2 + $0x8] sm:$0xff]  ;;  %v1383_v38 = vld [vmem:[%s1900_s2] sm:$0xff]  ;;  %p1514_p12 = scmp.ne.s32.totalorder %s1512_s24, %s1513_s18  ;;  %p1518_p1 = scmp.lt.s32.totalorder %s1512_s24, %s1904_s6 }
  0x1b   : > { %v340_v7 = vunpack.c.h.b16 %v332_v1  ;;  %v341_v8 = vunpack.c.l.b16 %v333_v2  ;;  %v1392_v37 = vld [vmem:[%s1900_s2 + $0x48] sm:$0xff]  ;;  %v1422_v39 = vld [vmem:[%s1900_s2 + $0x138] sm:$0xff]  ;;  %v1421_v40 = vld [vmem:[%s1900_s2 + $0x130] sm:$0xff]  ;;  %p1519_p2 = scmp.lt.s32.totalorder %s1517_s30, %s1513_s18 }
  0x1c   : > { %v343_v9 = vpack.c.b16 %v337_v3, %v337_v3  ;;  %v344_v10 = vpack.c.b16 %v338_v4, %v338_v4  ;;  %v345_v11 = vpack.c.b16 %v339_v5, %v339_v5  ;;  %v348_v12 = vpack.c.b16 %v342_v6, %v342_v6  ;;  %v1405_v41 = vld [vmem:[%s1900_s2 + $0xb0] sm:$0xff]  ;;  %v1420_v43 = vld [vmem:[%s1900_s2 + $0x128] sm:$0xff]  ;;  %v1391_v44 = vld [vmem:[%s1900_s2 + $0x40] sm:$0xff]  ;;  %p1515_p13 = pnand %p1514_p12, %p1652_p4 }
  0x1d   : > { %v346_v13 = vpack.c.b16 %v340_v7, %v340_v7  ;;  %v347_v14 = vpack.c.b16 %v341_v8, %v341_v8  ;;  %v1413_v42 = vld [vmem:[%s1900_s2 + $0xf0] sm:$0xff]  ;;  %v1404_v45 = vld [vmem:[%s1900_s2 + $0xa8] sm:$0xff]  ;;  %v1430_v46 = vld [vmem:[%s1900_s2 + $0x178] sm:$0xff]  ;;  %p1520_p3 = por %p1519_p2, %p1518_p1 }
  0x1e   : > { %v355_v15 = vsel %vm353_vm0, %v343_v9, 0  ;;  %v358_v16 = vsel %vm353_vm0, %v344_v10, 0  ;;  %v361_v17 = vsel %vm353_vm0, %v345_v11, 0  ;;  %v370_v21 = vsel %vm353_vm0, %v348_v12, 0  ;;  %v1412_v47 = vld [vmem:[%s1900_s2 + $0xe8] sm:$0xff]  ;;  %v1419_v48 = vld [vmem:[%s1900_s2 + $0x120] sm:$0xff]  ;;  %p1516_p0 = pneg %p1515_p13 }
  0x1f   : > { %379 = vmatpush.bf16.msra.mxu1 %v355_v15  ;;  %405 = vmatpush.bf16.msra.mxu2 %v361_v17  ;;  %v364_v19 = vsel %vm353_vm0, %v346_v13, 0  ;;  %v367_v20 = vsel %vm353_vm0, %v347_v14, 0  ;;  %v1403_v49 = vld [vmem:[%s1900_s2 + $0xa0] sm:$0xff]  ;;  %v1429_v50 = vld [vmem:[%s1900_s2 + $0x170] sm:$0xff]  ;;  %v1418_v52 = vld [vmem:[%s1900_s2 + $0x118] sm:$0xff] }
  0x20   : > { %418 = vmatpush.bf16.msra.mxu3 %v364_v19  ;;  %431 = vmatpush.bf16.msra.mxu0 %v367_v20  ;;  %v1411_v51 = vld [vmem:[%s1900_s2 + $0xe0] sm:$0xff]  ;;  %v1402_v53 = vld [vmem:[%s1900_s2 + $0x98] sm:$0xff]  ;;  %v1428_v54 = vld [vmem:[%s1900_s2 + $0x168] sm:$0xff]  ;;  %p1521_p5 = pnand %p1520_p3, %p1516_p0 }
  0x21   : > { %v1410_v55 = vld [vmem:[%s1900_s2 + $0xd8] sm:$0xff]  ;;  %v1417_v56 = vld [vmem:[%s1900_s2 + $0x110] sm:$0xff]  ;;  %v1427_v58 = vld [vmem:[%s1900_s2 + $0x160] sm:$0xff] }
  0x22   : > { %1149 = vmatmul.msk.bf16.vlgmr.msra.gmra.mxu1 %vm349_vm1, %v330_v18  ;;  %1151 = vmatmul.msk.bf16.vlgmr.msra.gmra.mxu2 %vm349_vm1, %v330_v18  ;;  %v1401_v57 = vld [vmem:[%s1900_s2 + $0x90] sm:$0xff]  ;;  %v1416_v60 = vld [vmem:[%s1900_s2 + $0x108] sm:$0xff]  ;;  %v1426_v62 = vld [vmem:[%s1900_s2 + $0x158] sm:$0xff] }
  0x23   : > { %392 = vmatpush.bf16.msrb.mxu1 %v358_v16  ;;  %1152 = vmatmul.msk.bf16.vlgmr.msra.gmra.mxu3 %vm349_vm1, %v330_v18  ;;  %v1409_v59 = vld [vmem:[%s1900_s2 + $0xd0] sm:$0xff]  ;;  %v1400_v61 = vld [vmem:[%s1900_s2 + $0x88] sm:$0xff]  ;;  %v1415_v0 = vld [vmem:[%s1900_s2 + $0x100] sm:$0xff] }
  0x24   : > { %1153 = vmatmul.msk.bf16.vlgmr.msra.gmra.mxu0 %vm349_vm1, %v330_v18  ;;  %865 = vmatpush.bf16.msrb.mxu2 %v1390_v22  ;;  %v1408_v63 = vld [vmem:[%s1900_s2 + $0xc8] sm:$0xff]  ;;  %v1399_v1 = vld [vmem:[%s1900_s2 + $0x80] sm:$0xff]  ;;  %v1425_v2 = vld [vmem:[%s1900_s2 + $0x150] sm:$0xff] }
  0x25   : > { %878 = vmatpush.bf16.msrb.mxu3 %v1398_v23  ;;  %891 = vmatpush.bf16.msrb.mxu0 %v1406_v26  ;;  %v1407_v3 = vld [vmem:[%s1900_s2 + $0xc0] sm:$0xff]  ;;  %v1424_v4 = vld [vmem:[%s1900_s2 + $0x148] sm:$0xff] }
  0x26   : > { %v1423_v5 = vld [vmem:[%s1900_s2 + $0x140] sm:$0xff]  ;;  %v1436_v26 = vld [vmem:[%s1902_s4 + $0x28] sm:$0xff] }
  0x27   : > { %444 = vmatpush.bf16.msra.mxu1 %v370_v21 }
  0x28   : > { %866 = vmatpush.bf16.msrb.mxu2 %v1389_v24  ;;  %v1438_v24 = vld [vmem:[%s1902_s4 + $0x38] sm:$0xff] }
  0x29   : > { %879 = vmatpush.bf16.msrb.mxu3 %v1397_v25  ;;  %892 = vmatpush.bf16.msrb.mxu0 %v1405_v41  ;;  %v1437_v25 = vld [vmem:[%s1902_s4 + $0x30] sm:$0xff] }
  0x2c   : > { %867 = vmatpush.bf16.msrb.mxu2 %v1388_v27  ;;  %v1435_v27 = vld [vmem:[%s1902_s4 + $0x20] sm:$0xff] }
  0x2d   : > { %880 = vmatpush.bf16.msrb.mxu3 %v1396_v28  ;;  %893 = vmatpush.bf16.msrb.mxu0 %v1404_v45  ;;  %v1434_v28 = vld [vmem:[%s1902_s4 + $0x18] sm:$0xff] }
  0x30   : > { %868 = vmatpush.bf16.msrb.mxu2 %v1387_v29  ;;  %v1433_v29 = vld [vmem:[%s1902_s4 + $0x10] sm:$0xff] }
  0x31   : > { %881 = vmatpush.bf16.msrb.mxu3 %v1395_v30  ;;  %894 = vmatpush.bf16.msrb.mxu0 %v1403_v49  ;;  %v1432_v30 = vld [vmem:[%s1902_s4 + $0x8] sm:$0xff] }
  0x32   : > { %1150 = vmatmul.msk.bf16.vlgmr.msrb.gmra.mxu1 %vm349_vm1, %v330_v18 }
  0x33   : > { %904 = vmatpush.bf16.msrb.mxu1 %v1414_v31 }
  0x34   : > { %869 = vmatpush.bf16.msrb.mxu2 %v1386_v32 }
  0x35   : > { %882 = vmatpush.bf16.msrb.mxu3 %v1394_v33  ;;  %895 = vmatpush.bf16.msrb.mxu0 %v1402_v53  ;;  %v1431_v33 = vld [vmem:[%s1902_s4] sm:$0xff] }
  0x37   : > { %905 = vmatpush.bf16.msrb.mxu1 %v1413_v42 }
  0x38   : > { %870 = vmatpush.bf16.msrb.mxu2 %v1385_v34 }
  0x39   : > { %883 = vmatpush.bf16.msrb.mxu3 %v1393_v35  ;;  %896 = vmatpush.bf16.msrb.mxu0 %v1401_v57 }
  0x3b   : > { %906 = vmatpush.bf16.msrb.mxu1 %v1412_v47 }
  0x3c   : > { %871 = vmatpush.bf16.msrb.mxu2 %v1384_v36 }
  0x3d   : > { %884 = vmatpush.bf16.msrb.mxu3 %v1392_v37  ;;  %897 = vmatpush.bf16.msrb.mxu0 %v1400_v61 }
  0x3f   : > { %907 = vmatpush.bf16.msrb.mxu1 %v1411_v51 }
  0x40   : > { %872 = vmatpush.bf16.msrb.mxu2 %v1383_v38  ;;  %v1495_v38 = vld [vmem:[%s1901_s3] ss:$0 sm:$0xff] }
  0x41   : > { %885 = vmatpush.bf16.msrb.mxu3 %v1391_v44  ;;  %898 = vmatpush.bf16.msrb.mxu0 %v1399_v1 }
  0x42   : > { %1154 = vmatmul.msk.bf16.vlgmr.msra.gmra.mxu1 %vm349_vm1, %v330_v18 }
  0x43   : > { %908 = vmatpush.bf16.msrb.mxu1 %v1410_v55 }
  0x44   : > { %917 = vmatpush.bf16.msra.mxu2 %v1422_v39 }
  0x45   : > { %930 = vmatpush.bf16.msra.mxu3 %v1430_v46  ;;  %1012 = vmatpush.bf16.msra.mxu0 %v1438_v24 }
  0x47   : > { %909 = vmatpush.bf16.msrb.mxu1 %v1409_v59 }
  0x48   : > { %918 = vmatpush.bf16.msra.mxu2 %v1421_v40 }
  0x49   : > { %931 = vmatpush.bf16.msra.mxu3 %v1429_v50  ;;  %1013 = vmatpush.bf16.msra.mxu0 %v1437_v25 }
  0x4b   : > { %910 = vmatpush.bf16.msrb.mxu1 %v1408_v63 }
  0x4c   : > { %919 = vmatpush.bf16.msra.mxu2 %v1420_v43 }
  0x4d   : > { %932 = vmatpush.bf16.msra.mxu3 %v1428_v54  ;;  %1014 = vmatpush.bf16.msra.mxu0 %v1436_v26 }
  0x4f   : > { %911 = vmatpush.bf16.msrb.mxu1 %v1407_v3 }
  0x50   : > { %920 = vmatpush.bf16.msra.mxu2 %v1419_v48 }
  0x51   : > { %933 = vmatpush.bf16.msra.mxu3 %v1427_v58  ;;  %1015 = vmatpush.bf16.msra.mxu0 %v1435_v27 }
  0x54   : > { %921 = vmatpush.bf16.msra.mxu2 %v1418_v52  ;;  %v1496_v52 = vld [vmem:[%s1903_s5] ss:$0 sm:$0xff] }
  0x55   : > { %934 = vmatpush.bf16.msra.mxu3 %v1426_v62  ;;  %1016 = vmatpush.bf16.msra.mxu0 %v1434_v28 }
  0x58   : > { %922 = vmatpush.bf16.msra.mxu2 %v1417_v56 }
  0x59   : > { %935 = vmatpush.bf16.msra.mxu3 %v1425_v2  ;;  %1017 = vmatpush.bf16.msra.mxu0 %v1433_v29 }
  0x5c   : > { %923 = vmatpush.bf16.msra.mxu2 %v1416_v60 }
  0x5d   : > { %936 = vmatpush.bf16.msra.mxu3 %v1424_v4  ;;  %1018 = vmatpush.bf16.msra.mxu0 %v1432_v30 }
  0x60   : > { %924 = vmatpush.bf16.msra.mxu2 %v1415_v0 }
  0x61   : > { %937 = vmatpush.bf16.msra.mxu3 %v1423_v5  ;;  %1019 = vmatpush.bf16.msra.mxu0 %v1431_v33 }
  0x9f   : > { %v381_v6 = vpop.f32.mrf.mxu1 }
  0xa0   : > { %v471_v7 = vpack.c.bf16 %v381_v6, %v381_v6 }
  0xa1   : > { %v433_v8 = vpop.f32.mrf.mxu0 }
  0xa2   : > { %873 = vmatmul.bf16.vlgmr.msrb.gmra.mxu2 %v471_v7  ;;  %v475_v16 = vpack.c.bf16 %v433_v8, %v433_v8 }
  0xa5   : > { %v407_v9 = vpop.f32.mrf.mxu2 }
  0xa6   : > { %v473_v10 = vpack.c.bf16 %v407_v9, %v407_v9  ;;  %v420_v11 = vpop.f32.mrf.mxu3 }
  0xa7   : > { %v383_v12 = vpop.f32.mrf.mxu1  ;;  %v474_v13 = vpack.c.bf16 %v420_v11, %v420_v11 }
  0xa8   : > { %899 = vmatmul.bf16.vlgmr.msrb.gmra.mxu0 %v473_v10 }
  0xa9   : > { %912 = vmatmul.bf16.vlgmr.msrb.gmra.mxu1 %v474_v13  ;;  %v435_v14 = vpop.f32.mrf.mxu0 }
  0xad   : > { %v409_v15 = vpop.f32.mrf.mxu2 }
  0xae   : > { %v422_v17 = vpop.f32.mrf.mxu3 }
  0xaf   : > { %v394_v18 = vpop.f32.mrf.mxu1 }
  0xb0   : > { %v472_v19 = vpack.c.bf16 %v394_v18, %v394_v18 }
  0xb2   : > { %886 = vmatmul.bf16.vlgmr.msrb.gmra.mxu3 %v472_v19  ;;  %925 = vmatmul.bf16.vlgmr.msra.gmra.mxu2 %v475_v16 }
  0xb7   : > { %v396_v20 = vpop.f32.mrf.mxu1 }
  0xbf   : > { %v446_v21 = vpop.f32.mrf.mxu1 }
  0xc0   : > { %v476_v22 = vpack.c.bf16 %v446_v21, %v446_v21 }
  0xc2   : > { %938 = vmatmul.bf16.vlgmr.msra.gmra.mxu3 %v476_v22 }
  0xc7   : > { %v448_v23 = vpop.f32.mrf.mxu1 }
 0x125   : > { %v874_v31 = vpop.f32.mrf.mxu2  ;;  %v900_v32 = vpop.f32.mrf.mxu0 }
 0x126   : > { %v913_v34 = vpop.f32.mrf.mxu1  ;;  %v875_v41 = vadd.f32 %v1495_v38, %v874_v31 }
 0x12d   : > { %v876_v35 = vpop.f32.mrf.mxu2  ;;  %v902_v36 = vpop.f32.mrf.mxu0 }
 0x12e   : > { %v915_v37 = vpop.f32.mrf.mxu1 }
 0x135   : > { %v887_v39 = vpop.f32.mrf.mxu3  ;;  %v926_v40 = vpop.f32.mrf.mxu2 }
 0x136   : > { %v888_v42 = vadd.f32 %v887_v39, %v875_v41 }
 0x138   : > { %v901_v43 = vadd.f32 %v900_v32, %v888_v42 }
 0x13a   : > { %v914_v46 = vadd.f32 %v913_v34, %v901_v43 }
 0x13c   : > { %v927_v47 = vadd.f32 %v926_v40, %v914_v46 }
 0x13d   : > { %v889_v44 = vpop.f32.mrf.mxu3  ;;  %v928_v45 = vpop.f32.mrf.mxu2 }
 0x145   : > { %v939_v48 = vpop.f32.mrf.mxu3 }
 0x146   : > { %v940_v49 = vadd.f32 %v939_v48, %v927_v47 }
 0x148   : > { %v943_v50 = vpack.c.bf16 %v940_v49, %v940_v49 }
 0x14a   : > { %1020 = vmatmul.bf16.vlgmr.msra.gmra.mxu0 %v943_v50 }
 0x14d   : > { %v941_v51 = vpop.f32.mrf.mxu3 }
 0x1c7   : > { %v1021_v53 = vpop.f32.mrf.mxu0 }
 0x1c8   : > { %v1022_v54 = vadd.f32 %v1496_v52, %v1021_v53 }
 0x1ca   : > { %1025 = vst [vmem:[%s296_s14] sm:$0xff] %v1022_v54 }
 0x1cb   : > { %1524 = shalt.err (!%p1521_p5)
}
 0x1cc   : > { %1440 = dma.vmem_to_hbm [thread:$0]  (%p1652_p4), %s1041_s15, 128, %s1043_s16, %s1027_s17  }
 0x1cf   : > { %v1023_v55 = vpop.f32.mrf.mxu0 }
 0x1d0 PF: > { %p1446_p6 = scmp.ge.s32.totalorder %s1575_s26, 2  ;;  %s1054_s20 = sand.u32 1, %s1555_s21  }
 0x1d1   : > { %s1055_s11 = scalar_lea.sflag [#allocation4], %s1054_s20 }
 0x1d2   : > { %p1443_p7 = pnand %p1446_p6, %p1659_p8 }
 0x1d4   : > { %p1444_p9 = pneg %p1443_p7 }
 0x1d6   : > { %1550 = dma.done.wait (%p1444_p9), %s1055_s11, 128  }
 0x1d7   : > { %1552 = vsyncadd (%p1444_p9), %s1055_s11, 4294967168  ;;  %s19_s26 = sadd.s32 1, %s1575_s26   ;;  %s1907_s21 = smov %s1559_s22 }
 0x1d8   : > { %p16_p10 = scmp.ge.s32.totalorder %s19_s26, 4   ;;  %s1908_s22 = smov %s1563_s23 }
 0x1d9   : > { %s1909_s23 = smov %s1665_s10  ;;  %s1910_s24 = smov %s1571_s25 }
 0x1da   : > { %s1911_s25 = smov %s1913_s29  ;;  %18 = sbr.rel (!%p16_p10) target bundleno = 4 (0x4), region = 90 }
 0x1df   :  { %1061 = vsyncpa [#allocation4], 1 }
 0x1e0   :  { %1063 = vsyncpa [#allocation4 + $0x1], 1 }

</bundles_post_ra>
